<compile_context>
chip_gen: v6e
topology: v6e:2x2x1
jax: 0.10.0
libtpu: 0.0.40
codegen_flags: <defaults>
</compile_context>

<pallas_src>
import math

import jax
import jax.numpy as jnp
from jax.experimental import pallas as pl
from jax.experimental.pallas import tpu as pltpu


def _vdrop_kernel(mask_ref, seq_ref, out_ref):
    # mask_ref: (bt, 1, H) or (1, 1, H) in f32 — broadcast over the time axis.
    # seq_ref/out_ref: (bt, S, H) or (1, s_tile, H).
    # The multiply promotes to f32 (exact 1/(1-p) scale); cast back on store.
    out_ref[...] = (seq_ref[...] * mask_ref[...]).astype(out_ref.dtype)


def _chip_tile_params():
    """(target tile bytes, VMEM budget cap) tuned per TPU generation."""
    try:
        vmem_cap = int(pltpu.get_tpu_info().vmem_capacity_bytes)
    except Exception:  # pragma: no cover - info query unavailable
        vmem_cap = 64 << 20  # conservative: v7x per-TC size
    if vmem_cap <= (64 << 20):
        # v7x: ~3.2 TB/s HBM -> bigger tiles amortize the fixed ~0.35us/step
        # overhead; 4 x 8 MiB in-flight buffers still fit 64 MiB comfortably.
        target = 8 << 20
    else:
        # v5e/v6e (128 MiB VMEM): mem-bound elementwise knee is ~4 MiB tiles.
        target = 4 << 20
    cap = max(16 << 20, (vmem_cap * 3) // 4)
    return target, cap


def _choose_s_tile(S, H, itemsize, target_bytes):
    """Largest S-tile with tile_bytes <= target, rounded to the dtype's native
    sublane multiple (8 for f32, 16 for bf16, 32 for int8/fp8) or full S."""
    sub = max(8, 32 // itemsize)
    max_s = max(1, target_bytes // max(1, H * itemsize))
    if max_s >= S:
        return S
    return max(sub, (max_s // sub) * sub)


def _lane_pack_factor(S, H):
    """Smallest k folding k time steps into the last axis so k*H % 128 == 0.

    Lane-dense output blocks avoid masked vst.msk partial stores (the dominant
    write path for this mem-bound kernel). Valid because the dropout mask value
    depends only on h = h' % H, so the fold/unfold round-trips exactly.
    """
    if H % 128 == 0:
        return 1
    k = 128 // math.gcd(H, 128)
    return k if (k > 1 and S % k == 0) else 1


def variational_dropout(seq, rate, seed, training=True, donate=False):
    """seq: (B, S, H). Returns seq * (shared-over-time inverted-dropout mask)."""
    if (not training) or rate == 0.0:
        # torch.nn.Dropout is identity in eval mode / with p == 0.
        return seq

    B, S, H = seq.shape
    rate = float(rate)
    scale = 1.0 / (1.0 - rate)
    orig_shape = seq.shape

    # One mask per (batch, hidden) position, broadcast over time. Kept in f32
    # (tiny) so bf16 activations are scaled by the exact 1/(1-p) value.
    key = jax.random.PRNGKey(seed)
    keep = jax.random.uniform(key, (B, 1, H), dtype=jnp.float32) >= rate
    mask = jnp.where(keep, jnp.float32(scale), jnp.float32(0.0))

    # Lane-dense packing for small / non-128-multiple hidden sizes.
    k = _lane_pack_factor(S, H)
    if k > 1:
        seq = seq.reshape(B, S // k, k * H)
        mask = jnp.tile(mask, (1, 1, k))  # mask value depends only on h' % H
        S, H = S // k, k * H

    itemsize = jnp.dtype(seq.dtype).itemsize
    target_bytes, vmem_cap = _chip_tile_params()
    row_bytes = S * H * itemsize

    if row_bytes <= target_bytes:
        # Short rows: tile over batch so each DMA stays multi-MiB and the grid
        # step count (fixed ~0.35us overhead each) shrinks by b_tile.
        b_tile = int(min(B, max(1, target_bytes // max(1, row_bytes))))
        grid = (pl.cdiv(B, b_tile),)
        in_specs = [
            pl.BlockSpec((b_tile, 1, H), lambda b: (b, 0, 0)),   # mask (f32)
            pl.BlockSpec((b_tile, S, H), lambda b: (b, 0, 0)),   # seq
        ]
        out_spec = pl.BlockSpec((b_tile, S, H), lambda b: (b, 0, 0))
        tile_bytes = b_tile * row_bytes
        mask_blk_bytes = b_tile * H * 4
    else:
        s_tile = _choose_s_tile(S, H, itemsize, target_bytes)
        n_s = pl.cdiv(S, s_tile)
        # Flat 1-D grid, B-major / S-minor: the mask block index is constant
        # across consecutive steps of one row (Pallas elides its re-DMA), and a
        # single parallel axis load-balances both v7x TensorCores even at B==1.
        grid = (B * n_s,)
        in_specs = [
            pl.BlockSpec((1, 1, H), lambda i: (i // n_s, 0, 0)),          # mask
            pl.BlockSpec((1, s_tile, H), lambda i: (i // n_s, i % n_s, 0)),  # seq
        ]
        out_spec = pl.BlockSpec((1, s_tile, H), lambda i: (i // n_s, i % n_s, 0))
        tile_bytes = s_tile * H * itemsize
        mask_blk_bytes = H * 4

    # VMEM budget: 2 double-buffered copies each of the seq and out tiles plus
    # the (tiny) mask buffers and slack; capped at 3/4 of physical VMEM and
    # never below the 16 MiB v5e scoped default.
    vmem_budget = int(min(vmem_cap, 4 * tile_bytes + 2 * mask_blk_bytes + (2 << 20)))
    vmem_budget = max(vmem_budget, 16 << 20)

    out = pl.pallas_call(
        _vdrop_kernel,
        out_shape=jax.ShapeDtypeStruct(seq.shape, seq.dtype),
        grid=grid,
        in_specs=in_specs,
        out_specs=out_spec,
        # seq -> out aliasing only when the caller donates `seq`.
        input_output_aliases=({1: 0} if donate else {}),
        compiler_params=pltpu.CompilerParams(
            dimension_semantics=("parallel",),
            vmem_limit_bytes=vmem_budget,
        ),
    )(mask, seq)

    if k > 1:
        out = out.reshape(orig_shape)
    return out


if __name__ == "__main__":
    key = jax.random.PRNGKey(0)
    B, S, H = 2, 8, 32
    rate = 0.3

    # Strictly positive inputs so we can recover the mask via division below.
    seq = jax.random.uniform(key, (B, S, H), dtype=jnp.float32,
                             minval=0.5, maxval=1.5)

    out = variational_dropout(seq, rate, seed=42, training=True)
    out = jax.block_until_ready(out)

    # Semantic checks (exact PRNG stream differs from torch, but semantics match):
    #  1) every element is either dropped (0) or scaled by 1/(1-p)
    #  2) the mask is identical across the time axis (variational dropout)
    ratio = out / seq
    scale = 1.0 / (1.0 - rate)
    is_zero = jnp.isclose(ratio, 0.0, atol=1e-5)
    is_scale = jnp.isclose(ratio, scale, atol=1e-4)
    assert bool(jnp.all(is_zero | is_scale)), "mask values not in {0, 1/(1-p)}"
    assert bool(jnp.all(jnp.isclose(ratio, ratio[:, :1, :], atol=1e-5))), \
        "mask not shared across the sequence axis"

    # Eval mode is identity.
    out_eval = variational_dropout(seq, rate, seed=42, training=False)
    assert bool(jnp.all(out_eval == seq))

    print("KERNEL_OK")
</pallas_src>

<mosaic_0001>
module attributes {stable_mosaic.version = 11 : i64} {
  func.func @_vdrop_kernel(%arg0: i32, %arg1: memref<2x1x128xf32, #tpu.memory_space<vmem>>, %arg2: memref<2x2x128xf32, #tpu.memory_space<vmem>>, %arg3: memref<2x2x128xf32, #tpu.memory_space<vmem>>) attributes {dimension_semantics = [#tpu.dimension_semantics<parallel>], iteration_bounds = array<i64: 1>, scalar_prefetch = 0 : i64, scratch_operands = 0 : i64, tpu.core_type = #tpu.core_type<tc>, window_params = [{transform_indices = @transform_0, window_bounds = array<i64: 2, 1, 128>}, {transform_indices = @transform_1, window_bounds = array<i64: 2, 2, 128>}, {transform_indices = @transform_2, window_bounds = array<i64: 2, 2, 128>}]} {
    %c0 = arith.constant 0 : index
    %c0_0 = arith.constant 0 : index
    %c0_1 = arith.constant 0 : index
    %0 = vector.load %arg2[%c0, %c0_0, %c0_1] : memref<2x2x128xf32, #tpu.memory_space<vmem>>, vector<2x2x128xf32>
    %c0_2 = arith.constant 0 : index
    %c0_3 = arith.constant 0 : index
    %c0_4 = arith.constant 0 : index
    %1 = vector.load %arg1[%c0_2, %c0_3, %c0_4] : memref<2x1x128xf32, #tpu.memory_space<vmem>>, vector<2x1x128xf32>
    %2 = vector.broadcast %1 : vector<2x1x128xf32> to vector<2x2x128xf32>
    %3 = arith.mulf %0, %2 : vector<2x2x128xf32>
    %c0_5 = arith.constant 0 : index
    %c0_6 = arith.constant 0 : index
    %c0_7 = arith.constant 0 : index
    %4 = vector.load %arg3[%c0_5, %c0_6, %c0_7] : memref<2x2x128xf32, #tpu.memory_space<vmem>>, vector<2x2x128xf32>
    tpu.vector_store %arg3[%c0_5, %c0_6, %c0_7], %3 {strides = array<i32>} : memref<2x2x128xf32, #tpu.memory_space<vmem>>, vector<2x2x128xf32>,
    return
  }
  func.func @transform_0(%arg0: i32) -> (i32, i32, i32) {
    %c0_i32 = arith.constant 0 : i32
    %c0_i32_0 = arith.constant 0 : i32
    %c0_i32_1 = arith.constant 0 : i32
    return %arg0, %c0_i32, %c0_i32_0 : i32, i32, i32
  }
  func.func @transform_1(%arg0: i32) -> (i32, i32, i32) {
    %c0_i32 = arith.constant 0 : i32
    %c0_i32_0 = arith.constant 0 : i32
    %c0_i32_1 = arith.constant 0 : i32
    return %arg0, %c0_i32, %c0_i32_0 : i32, i32, i32
  }
  func.func @transform_2(%arg0: i32) -> (i32, i32, i32) {
    %c0_i32 = arith.constant 0 : i32
    %c0_i32_0 = arith.constant 0 : i32
    %c0_i32_1 = arith.constant 0 : i32
    return %arg0, %c0_i32, %c0_i32_0 : i32, i32, i32
  }
}

</mosaic_0001>

<bundles_post_ra>
// kernel: tpu_custom_call.1
= control target key start
LH: loop header
LB: loop body
LE: loop exit
PB: predicated region body
PF: predicated region fallthrough
CT: control target
= control target key end

     0   :  { %7 = vsyncpa [#allocation3], 0  ;;  %s184_s0 = inlined_call_operand.hbm [shape: f32[2,1,128], index: 0, kind: input, shape index: {}]   ;;  %s185_s1 = inlined_call_operand.hbm [shape: f32[2,2,128], index: 1, kind: input, shape index: {}]   ;;  %s186_s2 = inlined_call_operand.hbm [shape: f32[2,2,128], index: 2, kind: output, shape index: {}]  }
   0x1   :  { %8 = vsyncpa [#allocation6], 0 }
   0x2   :  { %9 = vsyncpa [#allocation4], 0  ;;  %s153_s9 = smov [#allocation2]  }
   0x3   :  { %s15_s10 = sshll.u32 %s153_s9, 4  ;;  %s16_s10 = int_to_ptr.vmem [resolvable:$true] %s15_s10 }
   0x4   :  { %s95_s11 = scalar_lea.vmem %s16_s10, 32  ;;  %p100_p1 = scmp.lt.s32.totalorder %s16_s10, %s16_s10 }
   0x5   :  { %p96_p0 = scmp.ne.s32.totalorder %s16_s10, %s95_s11  ;;  %p101_p2 = scmp.lt.s32.totalorder %s95_s11, %s95_s11 }
   0x7   :  { %p102_p3 = por %p101_p2, %p100_p1 }
   0x9   :  { %p103_p4 = pnand %p102_p3, %p96_p0 }
   0xb   :  { %106 = shalt.err (!%p103_p4)
}
   0xc   :  { %s154_s12 = smov 16   ;;  %s155_s13 = smov 1  }
   0xd   :  { %21 = dma.hbm_to_vmem [thread:$0]  %s184_s0, 32, %s16_s10, [#allocation3], %s154_s12, %s154_s12, %s155_s13  }
   0xe   :  { %s156_s16 = smov [#allocation5]  }
   0xf   :  { %s27_s17 = sshll.u32 %s156_s16, 4  ;;  %s28_s17 = int_to_ptr.vmem [resolvable:$true] %s27_s17 }
  0x10   :  { %s115_s18 = scalar_lea.vmem %s28_s17, 64  ;;  %p120_p6 = scmp.lt.s32.totalorder %s28_s17, %s28_s17 }
  0x11   :  { %p116_p5 = scmp.ne.s32.totalorder %s28_s17, %s115_s18  ;;  %p121_p7 = scmp.lt.s32.totalorder %s115_s18, %s115_s18 }
  0x13   :  { %p122_p8 = por %p121_p7, %p120_p6 }
  0x15   :  { %p123_p9 = pnand %p122_p8, %p116_p5 }
  0x17   :  { %126 = shalt.err (!%p123_p9)
}
  0x18   :  { %s157_s19 = smov 32   ;;  %s158_s20 = smov 2  }
  0x19   :  { %33 = dma.hbm_to_vmem [thread:$0]  %s185_s1, 64, %s28_s17, [#allocation6], %s157_s19, %s157_s19, %s158_s20  }
  0x1a   :  { %147 = dma.done.wait [#allocation3], 32  }
  0x1b   :  { %148 = vsyncadd [#allocation3], 4294967264 }
  0x1c   :  { %149 = dma.done.wait [#allocation6], 64  }
  0x1d   :  { %150 = vsyncadd [#allocation6], 4294967232  ;;  %s159_s0 = smov [#allocation7]   ;;  %v40_v0 = vld [vmem:[#allocation5] sm:$0x3] }
  0x1e   :  { %s65_s23 = sshll.u32 %s159_s0, 4  ;;  %v78_v1 = vld [vmem:[#allocation2] ss:$0 sm:$0xff]  ;;  %v41_v2 = vld [vmem:[#allocation5 + $0x2] sm:$0x3]  ;;  %s66_s23 = int_to_ptr.vmem [resolvable:$true] %s65_s23 }
  0x1f   :  { %v56_v3 = vmul.f32 %v78_v1, %v40_v0  ;;  %v79_v4 = vld [vmem:[#allocation2 + $0x1] ss:$0 sm:$0xff]  ;;  %s127_s24 = scalar_lea.vmem %s66_s23, 64  ;;  %p132_p11 = scmp.lt.s32.totalorder %s66_s23, %s66_s23 }
  0x20   :  { %v57_v5 = vmul.f32 %v79_v4, %v41_v2  ;;  %p128_p10 = scmp.ne.s32.totalorder %s66_s23, %s127_s24  ;;  %p133_p12 = scmp.lt.s32.totalorder %s127_s24, %s127_s24 }
  0x21   :  { %58 = vst [vmem:[#allocation7] sm:$0x3] %v56_v3 }
  0x22   :  { %59 = vst [vmem:[#allocation7 + $0x2] sm:$0x3] %v57_v5  ;;  %p134_p13 = por %p133_p12, %p132_p11 }
  0x24   :  { %p135_p0 = pnand %p134_p13, %p128_p10 }
  0x26   :  { %138 = shalt.err (!%p135_p0)
}
  0x27   :  { %71 = dma.vmem_to_hbm [thread:$0]  %s66_s23, 64, %s186_s2, [#allocation4], %s157_s19, %s157_s19, %s158_s20  }
  0x28   :  { %151 = dma.done.wait [#allocation4], 64  }
  0x29   :  { %152 = vsyncadd [#allocation4], 4294967232 }
  0x2a   :  { %75 = vsyncpa [#allocation3], 1 }
  0x2b   :  { %76 = vsyncpa [#allocation6], 1 }
  0x2c   :  { %77 = vsyncpa [#allocation4], 1 }

</bundles_post_ra>
